<compile_context>
chip_gen: v6e
topology: v6e:2x2x1
jax: 0.10.0
libtpu: 0.0.40
codegen_flags: <defaults>
</compile_context>

<pallas_src>
import functools

import jax
import jax.numpy as jnp
import numpy as np
from jax import lax
from jax.experimental import pallas as pl
from jax.experimental.pallas import tpu as pltpu


def _ce_ls_kernel(x_ref, lbl_ref, out_ref, *,
                  smoothing, num_classes, s_valid, b_valid, tile_s, tile_b):
    b_blk = pl.program_id(0)
    s_blk = pl.program_id(1)

    comp = jnp.float32(1.0 - smoothing)
    sc = jnp.float32(smoothing / num_classes)
    need_b_mask = (b_valid % tile_b) != 0      # static (trace-time) decisions
    need_s_mask = (s_valid % tile_s) != 0

    # Hoisted: one-hot comparison iota over the class (sublane) axis.
    c_iota = jax.lax.broadcasted_iota(jnp.int32, (num_classes, tile_s), 0)

    def one_slice(bi):
        x = x_ref[bi].astype(jnp.float32)                  # (C, tile_s) f32 compute
        lbl = lbl_ref[bi].astype(jnp.int32)                # (1, tile_s)
        m = jnp.max(x, axis=0, keepdims=True)              # (1, tile_s)
        z = x - m
        lse = jnp.log(jnp.sum(jnp.exp(z), axis=0, keepdims=True))
        oh = lbl == c_iota                                 # (C, tile_s) bool
        z_lbl = jnp.sum(jnp.where(oh, z, 0.0), axis=0, keepdims=True)
        if smoothing == 0.0:                               # static fast path
            return lse - z_lbl
        z_sum = jnp.sum(z, axis=0, keepdims=True)
        return lse - comp * z_lbl - sc * z_sum             # (1, tile_s)

    if tile_b == 1:
        acc = one_slice(0)
    else:
        def body(bi, acc):
            loss_col = one_slice(bi)
            if need_b_mask:
                # batch-tail mask (select, not multiply: garbage cols may be NaN)
                b_abs = jnp.broadcast_to(b_blk * tile_b + bi, (1, tile_s))
                loss_col = jnp.where(b_abs < b_valid, loss_col, 0.0)
            return acc + loss_col
        acc = lax.fori_loop(0, tile_b, body,
                            jnp.zeros((1, tile_s), jnp.float32),
                            unroll=(tile_b <= 8))

    if need_s_mask:
        # spatial-tail mask of the ragged last block (NaN-safe select)
        col_idx = s_blk * tile_s + jax.lax.broadcasted_iota(
            jnp.int32, (1, tile_s), 1)
        acc = jnp.where(col_idx < s_valid, acc, 0.0)

    # Per-block partial sum, written lane-dense (all 128 lanes carry the value;
    # the wrapper reduces lane 0 only).
    total = jnp.sum(acc)
    out_ref[0, 0] = jnp.broadcast_to(total, (1, 128))


def _choose_tiles(B, C, S, x_itemsize, lbl_itemsize, *,
                  target_block_bytes, vmem_budget_bytes):
    """Pick (tile_b, tile_s) so blocks are big (~target bytes) but the padded
    double-buffered VMEM footprint stays under vmem_budget_bytes (v7x-safe)."""
    S_pad = -(-S // 128) * 128
    sub_x = 8 * max(1, 4 // x_itemsize)            # sublane multiple for logits dtype
    c_pad_x = -(-C // sub_x) * sub_x               # VMEM-padded class count (native dtype)
    c_pad_f = -(-C // 8) * 8                       # VMEM-padded class count (f32 temps)
    lbl_sub = 8 * max(1, 4 // lbl_itemsize)        # labels pad 1 -> lbl_sub sublanes

    # conservative padded-VMEM bytes per (batch row, lane column) of one block:
    #   2x double-buffered logits + 2x double-buffered labels + ~4 f32 in-kernel temps
    per_col = (2 * c_pad_x * x_itemsize
               + 2 * lbl_sub * lbl_itemsize
               + 4 * c_pad_f * 4)

    # lane tile: (unpadded) logits block ~ target_block_bytes, capped by S and VMEM
    tile_s = (target_block_bytes // max(1, C * x_itemsize)) // 128 * 128
    tile_s = int(max(128, min(tile_s, S_pad)))
    max_cols = max(128, (vmem_budget_bytes // per_col) // 128 * 128)
    tile_s = min(tile_s, max_cols)

    # if one tile already covers all of S and the block is still small, block
    # over batch too so per-step bytes stay large (small-S workloads)
    tile_b = 1
    if tile_s >= S_pad and B > 1:
        want = target_block_bytes // max(1, tile_s * C * x_itemsize)
        cap = vmem_budget_bytes // max(1, tile_s * per_col)
        tile_b = int(max(1, min(B, want, cap)))
    return tile_b, tile_s, per_col


def ce_loss_with_ls(inputs, labels, *, classes, smoothing=0.0,
                    target_block_bytes=4 << 20, vmem_budget_bytes=36 << 20):
    """inputs: [B, C, D, H, W] float; labels: [B, D, H, W] int. Returns scalar f32."""
    B, C = int(inputs.shape[0]), int(inputs.shape[1])
    assert C == classes, "channel dim must equal number of classes"
    S = 1
    for d in inputs.shape[2:]:
        S *= int(d)

    # Free views only: no transpose, no pad, no dtype up-cast in the wrapper
    # (keep logits in their native narrow dtype; keep integer labels narrow).
    x = inputs.reshape(B, C, S)
    lbl = labels.reshape(B, 1, S)
    if not jnp.issubdtype(lbl.dtype, jnp.integer):
        lbl = lbl.astype(jnp.int32)

    x_itemsize = x.dtype.itemsize
    lbl_itemsize = lbl.dtype.itemsize
    tile_b, tile_s, per_col = _choose_tiles(
        B, C, S, x_itemsize, lbl_itemsize,
        target_block_bytes=target_block_bytes,
        vmem_budget_bytes=vmem_budget_bytes)

    grid_b = pl.cdiv(B, tile_b)
    grid_s = pl.cdiv(S, tile_s)

    # v7x megacore: make sure there are >= 2 blocks to shard across the 2 TCs.
    if grid_b * grid_s < 2:
        if S > 128:
            tile_s = max(128, (pl.cdiv(S, 2) + 127) // 128 * 128)
            grid_s = pl.cdiv(S, tile_s)
        elif B > 1:
            tile_b = pl.cdiv(B, 2)
            grid_b = pl.cdiv(B, tile_b)

    # Explicit scoped-VMEM limit: generous headroom over the estimate, but kept
    # well under v7x's 64 MiB physical VMEM (also raises v5e's 16 MiB default).
    est_vmem = tile_b * tile_s * per_col + (1 << 20)
    vmem_limit = int(min(max(est_vmem * 3 // 2, 32 << 20), 48 << 20))

    kernel = functools.partial(
        _ce_ls_kernel,
        smoothing=float(smoothing),
        num_classes=C,
        s_valid=S,
        b_valid=B,
        tile_s=tile_s,
        tile_b=tile_b,
    )

    cost = pl.CostEstimate(
        flops=int(8 * B * C * S),
        transcendentals=int(B * C * S + B * S),
        bytes_accessed=int(B * C * S * x_itemsize + B * S * lbl_itemsize
                           + grid_b * grid_s * 128 * 4),
    )

    partials = pl.pallas_call(
        kernel,
        out_shape=jax.ShapeDtypeStruct((grid_b, grid_s, 1, 128), jnp.float32),
        grid_spec=pltpu.PrefetchScalarGridSpec(
            num_scalar_prefetch=0,
            grid=(grid_b, grid_s),
            in_specs=[
                pl.BlockSpec((tile_b, C, tile_s), lambda b, s: (b, 0, s)),
                pl.BlockSpec((tile_b, 1, tile_s), lambda b, s: (b, 0, s)),
            ],
            out_specs=pl.BlockSpec((1, 1, 1, 128), lambda b, s: (b, s, 0, 0)),
        ),
        compiler_params=pltpu.CompilerParams(
            dimension_semantics=("parallel", "parallel"),
            vmem_limit_bytes=vmem_limit),
        cost_estimate=cost,
    )(x, lbl)

    # Tiny final reduction over the per-block partials (lane 0 only) in XLA.
    # TODO(synk): for B*S approaching 2^24 elements, accumulate/divide in f64.
    return jnp.sum(partials[..., 0]) / jnp.float32(B * S)


def _reference(inputs, labels, *, classes, smoothing):
    # Pure-JAX reference mirroring the PyTorch module.
    complement = 1.0 - smoothing
    cls_idx = jnp.arange(classes).reshape(1, classes)
    oh = (labels[..., None] == cls_idx).astype(jnp.float32)          # [B,D,H,W,C]
    oh = jnp.transpose(oh, (0, 4, 1, 2, 3))                           # [B,C,D,H,W]
    smooth = oh * complement + smoothing / classes
    logp = jax.nn.log_softmax(inputs.astype(jnp.float32), axis=1)
    return jnp.mean(jnp.sum(-smooth * logp, axis=1))


if __name__ == "__main__":
    key = jax.random.PRNGKey(0)

    # Case 1: spatial size a multiple of 128 (exercises batch-blocked tiles).
    B, C, D, H, W = 2, 4, 4, 8, 8
    smoothing = 0.1
    k_x, k_l, key = jax.random.split(key, 3)
    inputs = jax.random.normal(k_x, (B, C, D, H, W), dtype=jnp.float32)
    labels = jax.random.randint(k_l, (B, D, H, W), 0, C, dtype=jnp.int32)

    loss = ce_loss_with_ls(inputs, labels, classes=C, smoothing=smoothing)
    loss = jax.block_until_ready(loss)
    ref = _reference(inputs, labels, classes=C, smoothing=smoothing)
    assert np.allclose(np.asarray(loss), np.asarray(ref), rtol=1e-5, atol=1e-5), (
        f"mismatch (case 1): pallas={loss}, ref={ref}")

    # Case 2: ragged spatial size (exercises the in-kernel spatial edge mask).
    B2, C2, D2, H2, W2 = 2, 4, 3, 7, 9   # S = 189, not a multiple of 128
    k_x2, k_l2, key = jax.random.split(key, 3)
    inputs2 = jax.random.normal(k_x2, (B2, C2, D2, H2, W2), dtype=jnp.float32)
    labels2 = jax.random.randint(k_l2, (B2, D2, H2, W2), 0, C2, dtype=jnp.int32)

    loss2 = ce_loss_with_ls(inputs2, labels2, classes=C2, smoothing=smoothing)
    loss2 = jax.block_until_ready(loss2)
    ref2 = _reference(inputs2, labels2, classes=C2, smoothing=smoothing)
    assert np.allclose(np.asarray(loss2), np.asarray(ref2), rtol=1e-5, atol=1e-5), (
        f"mismatch (case 2): pallas={loss2}, ref={ref2}")

    # Case 3: odd batch + tiny spatial, smoothing=0 (exercises the batch-tail
    # mask, the ragged spatial mask, and the smoothing==0 fast path).
    B3, C3, D3, H3, W3 = 3, 4, 2, 4, 8   # S = 64
    k_x3, k_l3, key = jax.random.split(key, 3)
    inputs3 = jax.random.normal(k_x3, (B3, C3, D3, H3, W3), dtype=jnp.float32)
    labels3 = jax.random.randint(k_l3, (B3, D3, H3, W3), 0, C3, dtype=jnp.int32)

    loss3 = ce_loss_with_ls(inputs3, labels3, classes=C3, smoothing=0.0)
    loss3 = jax.block_until_ready(loss3)
    ref3 = _reference(inputs3, labels3, classes=C3, smoothing=0.0)
    assert np.allclose(np.asarray(loss3), np.asarray(ref3), rtol=1e-5, atol=1e-5), (
        f"mismatch (case 3): pallas={loss3}, ref={ref3}")

    print("KERNEL_OK")
</pallas_src>

<mosaic_0001>
module attributes {stable_mosaic.version = 11 : i64} {
  func.func @_ce_ls_kernel(%arg0: i32, %arg1: i32, %arg2: memref<2x4x128xf32, #tpu.memory_space<vmem>>, %arg3: memref<2x1x128xi32, #tpu.memory_space<vmem>>, %arg4: memref<1x1x1x128xf32, #tpu.memory_space<vmem>>) attributes {dimension_semantics = [#tpu.dimension_semantics<parallel>, #tpu.dimension_semantics<parallel>], iteration_bounds = array<i64: 1, 2>, scalar_prefetch = 0 : i64, scratch_operands = 0 : i64, tpu.core_type = #tpu.core_type<tc>, window_params = [{transform_indices = @transform_0, window_bounds = array<i64: 2, 4, 128>}, {transform_indices = @transform_1, window_bounds = array<i64: 2, 1, 128>}, {transform_indices = @transform_2, window_bounds = array<i64: 1, 1, 1, 128>}]} {
    %0 = tpu.iota {dimensions = array<i32: 0>} : vector<4x128xi32>
    %cst = arith.constant 0.000000e+00 : f32
    %1 = vector.broadcast %cst : f32 to vector<1x128xf32>
    %cst_0 = arith.constant 0.899999976 : f32
    %cst_1 = arith.constant 2.500000e-02 : f32
    %c0_i32 = arith.constant 0 : i32
    %2 = arith.index_cast %c0_i32 : i32 to index
    %c0 = arith.constant 0 : index
    %c0_2 = arith.constant 0 : index
    %3 = vector.load %arg2[%2, %c0, %c0_2] : memref<2x4x128xf32, #tpu.memory_space<vmem>>, vector<1x4x128xf32>
    %4 = vector.shape_cast %3 : vector<1x4x128xf32> to vector<4x128xf32>
    %5 = arith.index_cast %c0_i32 : i32 to index
    %c0_3 = arith.constant 0 : index
    %c0_4 = arith.constant 0 : index
    %6 = vector.load %arg3[%5, %c0_3, %c0_4] : memref<2x1x128xi32, #tpu.memory_space<vmem>>, vector<1x1x128xi32>
    %7 = vector.shape_cast %6 : vector<1x1x128xi32> to vector<1x128xi32>
    %cst_5 = arith.constant dense<0xFF800000> : vector<128xf32>
    %8 = vector.multi_reduction <maximumf>, %4, %cst_5 [0] : vector<4x128xf32> to vector<128xf32>
    %9 = vector.shape_cast %8 : vector<128xf32> to vector<1x128xf32>
    %10 = vector.broadcast %9 : vector<1x128xf32> to vector<4x128xf32>
    %11 = arith.subf %4, %10 : vector<4x128xf32>
    %12 = math.exp %11 : vector<4x128xf32>
    %cst_6 = arith.constant dense<0.000000e+00> : vector<128xf32>
    %13 = vector.multi_reduction <add>, %12, %cst_6 [0] : vector<4x128xf32> to vector<128xf32>
    %14 = vector.shape_cast %13 : vector<128xf32> to vector<1x128xf32>
    %15 = math.log %14 : vector<1x128xf32>
    %16 = vector.broadcast %7 : vector<1x128xi32> to vector<4x128xi32>
    %17 = arith.cmpi eq, %16, %0 : vector<4x128xi32>
    %cst_7 = arith.constant 0.000000e+00 : f32
    %18 = vector.broadcast %cst_7 : f32 to vector<4x128xf32>
    %19 = arith.select %17, %11, %18 : vector<4x128xi1>, vector<4x128xf32>
    %cst_8 = arith.constant dense<0.000000e+00> : vector<128xf32>
    %20 = vector.multi_reduction <add>, %19, %cst_8 [0] : vector<4x128xf32> to vector<128xf32>
    %21 = vector.shape_cast %20 : vector<128xf32> to vector<1x128xf32>
    %cst_9 = arith.constant dense<0.000000e+00> : vector<128xf32>
    %22 = vector.multi_reduction <add>, %11, %cst_9 [0] : vector<4x128xf32> to vector<128xf32>
    %23 = vector.shape_cast %22 : vector<128xf32> to vector<1x128xf32>
    %24 = vector.broadcast %cst_0 : f32 to vector<1x128xf32>
    %25 = arith.mulf %24, %21 : vector<1x128xf32>
    %26 = arith.subf %15, %25 : vector<1x128xf32>
    %27 = vector.broadcast %cst_1 : f32 to vector<1x128xf32>
    %28 = arith.mulf %27, %23 : vector<1x128xf32>
    %29 = arith.subf %26, %28 : vector<1x128xf32>
    %30 = arith.addf %1, %29 : vector<1x128xf32>
    %c1_i32 = arith.constant 1 : i32
    %31 = arith.index_cast %c1_i32 : i32 to index
    %c0_10 = arith.constant 0 : index
    %c0_11 = arith.constant 0 : index
    %32 = vector.load %arg2[%31, %c0_10, %c0_11] : memref<2x4x128xf32, #tpu.memory_space<vmem>>, vector<1x4x128xf32>
    %33 = vector.shape_cast %32 : vector<1x4x128xf32> to vector<4x128xf32>
    %34 = arith.index_cast %c1_i32 : i32 to index
    %c0_12 = arith.constant 0 : index
    %c0_13 = arith.constant 0 : index
    %35 = vector.load %arg3[%34, %c0_12, %c0_13] : memref<2x1x128xi32, #tpu.memory_space<vmem>>, vector<1x1x128xi32>
    %36 = vector.shape_cast %35 : vector<1x1x128xi32> to vector<1x128xi32>
    %cst_14 = arith.constant dense<0xFF800000> : vector<128xf32>
    %37 = vector.multi_reduction <maximumf>, %33, %cst_14 [0] : vector<4x128xf32> to vector<128xf32>
    %38 = vector.shape_cast %37 : vector<128xf32> to vector<1x128xf32>
    %39 = vector.broadcast %38 : vector<1x128xf32> to vector<4x128xf32>
    %40 = arith.subf %33, %39 : vector<4x128xf32>
    %41 = math.exp %40 : vector<4x128xf32>
    %cst_15 = arith.constant dense<0.000000e+00> : vector<128xf32>
    %42 = vector.multi_reduction <add>, %41, %cst_15 [0] : vector<4x128xf32> to vector<128xf32>
    %43 = vector.shape_cast %42 : vector<128xf32> to vector<1x128xf32>
    %44 = math.log %43 : vector<1x128xf32>
    %45 = vector.broadcast %36 : vector<1x128xi32> to vector<4x128xi32>
    %46 = arith.cmpi eq, %45, %0 : vector<4x128xi32>
    %cst_16 = arith.constant 0.000000e+00 : f32
    %47 = vector.broadcast %cst_16 : f32 to vector<4x128xf32>
    %48 = arith.select %46, %40, %47 : vector<4x128xi1>, vector<4x128xf32>
    %cst_17 = arith.constant dense<0.000000e+00> : vector<128xf32>
    %49 = vector.multi_reduction <add>, %48, %cst_17 [0] : vector<4x128xf32> to vector<128xf32>
    %50 = vector.shape_cast %49 : vector<128xf32> to vector<1x128xf32>
    %cst_18 = arith.constant dense<0.000000e+00> : vector<128xf32>
    %51 = vector.multi_reduction <add>, %40, %cst_18 [0] : vector<4x128xf32> to vector<128xf32>
    %52 = vector.shape_cast %51 : vector<128xf32> to vector<1x128xf32>
    %53 = vector.broadcast %cst_0 : f32 to vector<1x128xf32>
    %54 = arith.mulf %53, %50 : vector<1x128xf32>
    %55 = arith.subf %44, %54 : vector<1x128xf32>
    %56 = vector.broadcast %cst_1 : f32 to vector<1x128xf32>
    %57 = arith.mulf %56, %52 : vector<1x128xf32>
    %58 = arith.subf %55, %57 : vector<1x128xf32>
    %59 = arith.addf %30, %58 : vector<1x128xf32>
    %c2_i32 = arith.constant 2 : i32
    %60 = vector.shape_cast %59 : vector<1x128xf32> to vector<1x1x128xf32>
    %cst_19 = arith.constant dense<0.000000e+00> : vector<1xf32>
    %61 = vector.multi_reduction <add>, %60, %cst_19 [1, 2] : vector<1x1x128xf32> to vector<1xf32>
    %62 = vector.shape_cast %61 : vector<1xf32> to vector<1x1x1xf32>
    %63 = vector.extract %62[0, 0, 0] : f32 from vector<1x1x1xf32>
    %64 = vector.broadcast %63 : f32 to vector<1x128xf32>
    %c0_20 = arith.constant 0 : index
    %c0_21 = arith.constant 0 : index
    %c0_22 = arith.constant 0 : index
    %c0_23 = arith.constant 0 : index
    %65 = vector.load %arg4[%c0_20, %c0_21, %c0_22, %c0_23] : memref<1x1x1x128xf32, #tpu.memory_space<vmem>>, vector<1x1x1x128xf32>
    %66 = vector.shape_cast %65 : vector<1x1x1x128xf32> to vector<1x128xf32>
    %67 = vector.shape_cast %64 : vector<1x128xf32> to vector<1x1x1x128xf32>
    tpu.vector_store %arg4[%c0_20, %c0_21, %c0_22, %c0_23], %67 {strides = array<i32>} : memref<1x1x1x128xf32, #tpu.memory_space<vmem>>, vector<1x1x1x128xf32>,
    return
  }
  func.func @transform_0(%arg0: i32, %arg1: i32) -> (i32, i32, i32) {
    %c0_i32 = arith.constant 0 : i32
    %c0_i32_0 = arith.constant 0 : i32
    return %arg0, %c0_i32, %arg1 : i32, i32, i32
  }
  func.func @transform_1(%arg0: i32, %arg1: i32) -> (i32, i32, i32) {
    %c0_i32 = arith.constant 0 : i32
    %c0_i32_0 = arith.constant 0 : i32
    return %arg0, %c0_i32, %arg1 : i32, i32, i32
  }
  func.func @transform_2(%arg0: i32, %arg1: i32) -> (i32, i32, i32, i32) {
    %c0_i32 = arith.constant 0 : i32
    %c0_i32_0 = arith.constant 0 : i32
    %c0_i32_1 = arith.constant 0 : i32
    return %arg0, %arg1, %c0_i32, %c0_i32_0 : i32, i32, i32, i32
  }
}

</mosaic_0001>

<bundles_post_ra>
// kernel: tpu_custom_call.1
= control target key start
LH: loop header
LB: loop body
LE: loop exit
PB: predicated region body
PF: predicated region fallthrough
CT: control target
= control target key end

     0   :  { %s895_s0 = inlined_call_operand.hbm [shape: f32[2,4,256], index: 0, kind: input, shape index: {}]   ;;  %s896_s1 = inlined_call_operand.hbm [shape: s32[2,1,256], index: 1, kind: input, shape index: {}]   ;;  %s897_s2 = inlined_call_operand.hbm [shape: f32[1,2,1,128], index: 2, kind: output, shape index: {}]  }
   0x1   :  { %898 = sst [smem:[#allocation11_spill]] %s895_s0 }
   0x2   :  { %7 = vsyncpa [#allocation3], 0 }
   0x3   :  { %9 = vsyncpa [#allocation3 + $0x1], 0 }
   0x4   :  { %10 = vsyncpa [#allocation6], 0 }
   0x5   :  { %12 = vsyncpa [#allocation6 + $0x1], 0 }
   0x6   :  { %13 = vsyncpa [#allocation4], 0 }
   0x7   :  { %15 = vsyncpa [#allocation4 + $0x1], 0  ;;  %s720_s9 = smov 0   ;;  %s722_s10 = smov 0  }
   0x8   :  { %s724_s11 = smov 0   ;;  %s726_s12 = smov 0  }
   0x9   :  { %s728_s13 = smov 0   ;;  %s730_s14 = smov 0  }
   0xa LB: > { %s453_s15 = sadd.s32 4294967295, %s694_s14   ;;  %s454_s16 = sadd.s32 4294967294, %s694_s14   ;;  %s694_s14 = sphi %s730_s14, %s21_s14   ;;  %s690_s13 = sphi %s728_s13, %s911_s13   ;;  %s686_s12 = sphi %s726_s12, %s910_s12   ;;  %s682_s11 = sphi %s724_s11, %s909_s11   ;;  %s678_s10 = sphi %s722_s10, %s908_s10   ;;  %s674_s9 = sphi %s720_s9, %s907_s9  }
   0xb   : > { %s30_s17 = sadd.s32 1, %s690_s13  ;;  %s42_s18 = sadd.s32 1, %s682_s11 }
   0xc   : > { %p31_p0 = scmp.ge.s32.totalorder %s30_s17, 2  ;;  %p49_p1 = scmp.ne.s32.totalorder %s682_s11, %s678_s10 }
   0xd   : > { %p50_p2 = scmp.eq.s32.totalorder %s694_s14, 0  ;;  %p55_p3 = scmp.ne.s32.totalorder %s678_s10, %s674_s9 }
   0xe   : > { %s913_s17 = smov (%p31_p0, %s30_s17), 0  ;;  %p56_p5 = scmp.eq.s32.totalorder %s453_s15, 0 }
   0xf   : > { %p761_p4 = por %p50_p2, %p49_p1  ;;  %s38_s20 = ssub.s32 %s690_s13, %s913_s17 }
  0x10   : > { %p109_p6 = scmp.eq.s32.totalorder %s453_s15, 1  ;;  %p40_p7 = scmp.eq.s32.totalorder %s38_s20, 0 }
  0x11   : > { %p767_p8 = por %p56_p5, %p55_p3  ;;  %p115_p10 = scmp.eq.s32.totalorder %s454_s16, 1 }
  0x12   : > { %p771_p9 = por %p109_p6, %p49_p1  ;;  %p490_p13 = scmp.lt.s32.totalorder %s694_s14, 2 }
  0x13   : > { %s776_s23 = scalar_select %p40_p7, %s682_s11, %s42_s18  }
  0x14   : > { %p778_p11 = por %p115_p10, %p55_p3  ;;  %s785_s25 = sand.u32 1, %s682_s11  }
  0x15   : > { %s457_s26 = sshll.u32 %s785_s25, 3  ;;  %s458_s27 = sshll.u32 %s690_s13, 6 }
  0x16   : > { %s903_s0 = sld [smem:[#allocation11_spill]]  ;;  %s139_s3 = scalar_lea.vmem [#allocation2], %s457_s26 }
  0x17   : > { %s148_s4 = sshll.u32 %s139_s3, 4  ;;  %p794_p0 = pnand %p490_p13, %p761_p4  ;;  %s149_s4 = int_to_ptr.vmem [resolvable:$true] %s148_s4 }
  0x18   : > { %s136_s6 = scalar_lea.sflag [#allocation3], %s785_s25  ;;  %s567_s7 = scalar_lea.vmem %s149_s4, 128 }
  0x19   : > { %p556_p1 = pneg %p794_p0  ;;  %p568_p2 = scmp.ne.s32.totalorder %s149_s4, %s567_s7 }
  0x1a   : > { %s696_s8 = smov [#allocation2]  }
  0x1b   : > { %p570_p3 = pnand %p568_p2, %p556_p1  ;;  %s572_s15 = sshll.u32 %s696_s8, 4  ;;  %s573_s15 = int_to_ptr.vmem [resolvable:$false] %s572_s15 }
  0x1c   : > { %s147_s30 = scalar_lea.hbm %s903_s0, %s458_s27  ;;  %s574_s16 = scalar_lea.vmem %s573_s15, 256 }
  0x1d   : > { %p571_p5 = pneg %p570_p3  ;;  %p575_p6 = scmp.lt.s32.totalorder %s149_s4, %s573_s15 }
  0x1e   : > { %p576_p4 = scmp.lt.s32.totalorder %s574_s16, %s567_s7 }
  0x20   : > { %p577_p7 = por %p576_p4, %p575_p6 }
  0x22   : > { %p578_p10 = pnand %p577_p7, %p571_p5 }
  0x24   : > { %581 = shalt.err (!%p578_p10)
}
  0x25   : > { %s697_s18 = smov 128   ;;  %s698_s19 = smov 64  }
  0x26   : > { %s699_s20 = smov 4   ;;  %p461_p13 = scmp.ge.s32.totalorder %s694_s14, 1 }
  0x27   : > { %482 = dma.hbm_to_vmem [thread:$0]  (!%p794_p0), %s147_s30, 128, %s149_s4, %s136_s6, %s697_s18, %s698_s19, %s699_s20  }
  0x28   : > { %p179_p2 = scmp.lt.s32.totalorder %s694_s14, 3  ;;  %s459_s26 = sshll.u32 %s785_s25, 1 }
  0x29   : > { %s460_s28 = sshll.u32 %s690_s13, 4  ;;  %s162_s29 = scalar_lea.vmem [#allocation5], %s459_s26 }
  0x2a   : > { %p809_p3 = pnand %p461_p13, %p179_p2  ;;  %s171_s3 = sshll.u32 %s162_s29, 4  ;;  %s172_s3 = int_to_ptr.vmem [resolvable:$true] %s171_s3 }
  0x2b   : > { %s170_s15 = scalar_lea.hbm %s896_s1, %s460_s28  ;;  %s159_s16 = scalar_lea.sflag [#allocation6], %s785_s25 }
  0x2c   : > { %s595_s0 = scalar_lea.vmem %s172_s3, 32  ;;  %s700_s30 = smov [#allocation5]  }
  0x2d   : > { %p596_p5 = scmp.ne.s32.totalorder %s172_s3, %s595_s0  ;;  %s600_s4 = sshll.u32 %s700_s30, 4  ;;  %s601_s4 = int_to_ptr.vmem [resolvable:$false] %s600_s4 }
  0x2e   : > { %s602_s6 = scalar_lea.vmem %s601_s4, 64  ;;  %p603_p7 = scmp.lt.s32.totalorder %s172_s3, %s601_s4 }
  0x2f   : > { %p598_p6 = pnand %p596_p5, %p556_p1  ;;  %p604_p10 = scmp.lt.s32.totalorder %s602_s6, %s595_s0 }
  0x31   : > { %p599_p4 = pneg %p598_p6  ;;  %p605_p13 = por %p604_p10, %p603_p7 }
  0x33   : > { %p606_p2 = pnand %p605_p13, %p599_p4 }
  0x35   : > { %609 = shalt.err (!%p606_p2)
}
  0x36   : > { %s701_s18 = smov 32   ;;  %s702_s19 = smov 16  }
  0x37   : > { %s703_s20 = smov 1   ;;  %183 = sbr.rel (%p809_p3) target bundleno = 347 (0x15b), region = 28 }
  0x38   : > { %485 = dma.hbm_to_vmem [thread:$0]  (!%p794_p0), %s170_s15, 32, %s172_s3, %s159_s16, %s701_s18, %s702_s19, %s703_s20  }
  0x39   : > { %s826_s25 = sand.u32 (!%p809_p3), 1, %s678_s10  }
  0x3a   : > { %s462_s26 = sshll.u32 (!%p809_p3), %s826_s25, 3  ;;  %s186_s0 = scalar_lea.sflag (!%p809_p3), [#allocation3], %s826_s25 }
  0x3b   : > { %s189_s28 = scalar_lea.vmem (!%p809_p3), [#allocation2], %s462_s26 }
  0x3c   : > { %661 = dma.done.wait (%p767_p8), %s186_s0, 128  }
  0x3d   : > { %663 = vsyncadd (%p767_p8), %s186_s0, 4294967168  ;;  %s463_s5 = sshll.u32 %s826_s25, 1  ;;  %s195_s27 = scalar_lea.sflag [#allocation6], %s826_s25 }
  0x3e   : > { %s198_s29 = scalar_lea.vmem [#allocation5], %s463_s5 }
  0x3f   : > { %665 = dma.done.wait (%p767_p8), %s195_s27, 32  }
  0x40   : > { %667 = vsyncadd (%p767_p8), %s195_s27, 4294967264  ;;  %vm229_vm0 = vcmask 1043456   ;;  %v227_v0 = vld [vmem:[%s189_s28] sm:$0xf]  ;;  %v465_v1 = vld [vmem:[%s189_s28 + $0x4] sm:$0xf]  ;;  %v225_v18 = vlaneseq }
  0x41   : > { %v230_v2 = vsel %vm229_vm0, %v227_v0, -inf  ;;  %v278_v3 = vsel %vm229_vm0, %v465_v1, -inf  ;;  %v464_v22 = vld [vmem:[%s198_s29] ss:$0 sm:$0xff]  ;;  %v467_v23 = vld [vmem:[%s198_s29 + $0x1] ss:$0 sm:$0xff] }
  0x42   : > { %v231_v4 = vrot.slane %v230_v2, 4  ;;  %v279_v5 = vrot.slane %v278_v3, 4  ;;  %v226_v21 = vshrl.u32 %v225_v18, 7  ;;  %vm322_vm3 = vcmask 1040384   ;;  %s222_s21 = scalar_lea.vmem [#allocation7], %s826_s25  ;;  %s468_s7 = sshll.u32 %s686_s12, 4 }
  0x43   : > { %s350_s3 = sshll.u32 %s222_s21, 4  ;;  %s348_s30 = scalar_lea.hbm %s897_s2, %s468_s7  ;;  %s850_s3 = int_to_ptr.vmem [resolvable:$true] %s350_s3 }
  0x44   : > { %v232_v6 = vmax.f32 %v230_v2, %v231_v4  ;;  %v280_v7 = vmax.f32 %v278_v3, %v279_v5  ;;  %vm253_vm1 = vcmp.eq.s32.totalorder %v464_v22, %v226_v21  ;;  %vm301_vm2 = vcmp.eq.s32.totalorder %v467_v23, %v226_v21  ;;  %s336_s4 = scalar_lea.sflag [#allocation4], %s826_s25  ;;  %s610_s6 = scalar_lea.vmem %s850_s3, 16 }
  0x45   : > { %p611_p8 = scmp.ne.s32.totalorder %s850_s3, %s610_s6  ;;  %s704_s18 = smov [#allocation7]  }
  0x46   : > { %v233_v8 = vrot.slane %v232_v6, 2  ;;  %v281_v9 = vrot.slane %v280_v7, 2  ;;  %s614_s12 = sshll.u32 %s704_s18, 4  ;;  %s615_s12 = int_to_ptr.vmem [resolvable:$false] %s614_s12 }
  0x47   : > { %p612_p0 = pnand %p611_p8, %p771_p9  ;;  %s616_s19 = scalar_lea.vmem %s615_s12, 32 }
  0x48   : > { %v234_v10 = vmax.f32 %v232_v6, %v233_v8  ;;  %v282_v11 = vmax.f32 %v280_v7, %v281_v9  ;;  %p617_p3 = scmp.lt.s32.totalorder %s850_s3, %s615_s12  ;;  %p618_p5 = scmp.lt.s32.totalorder %s616_s19, %s610_s6 }
  0x49   : > { %p613_p1 = pneg %p612_p0 }
  0x4a   : > { %v235_v12 = vrot.slane %v234_v10, 1  ;;  %v283_v13 = vrot.slane %v282_v11, 1  ;;  %p619_p6 = por %p618_p5, %p617_p3 }
  0x4c   : > { %v236_v14 = vmax.f32 %v234_v10, %v235_v12  ;;  %v284_v15 = vmax.f32 %v282_v11, %v283_v13  ;;  %p620_p4 = pnand %p619_p6, %p613_p1 }
  0x4e   : > { %v237_v16 = vsub.f32 %v227_v0, %v236_v14  ;;  %v285_v17 = vsub.f32 %v465_v1, %v284_v15 }
  0x50   : > { %v238_v19 = vmul.f32 1.442695, %v237_v16  ;;  %v286_v20 = vmul.f32 1.442695, %v285_v17  ;;  %v254_v24 = vsel %vm253_vm1, %v237_v16, 0.0  ;;  %v302_v25 = vsel %vm301_vm2, %v285_v17, 0.0 }
  0x51   : > { %v255_v26 = vsel %vm229_vm0, %v254_v24, 0.0  ;;  %v303_v28 = vsel %vm229_vm0, %v302_v25, 0.0  ;;  %v262_v31 = vsel %vm229_vm0, %v237_v16, 0.0  ;;  %v310_v35 = vsel %vm229_vm0, %v285_v17, 0.0 }
  0x52   : > { %546 = vpow2.f32 %v238_v19  ;;  %v256_v33 = vrot.slane %v255_v26, 4  ;;  %v304_v37 = vrot.slane %v303_v28, 4  ;;  %v263_v39 = vrot.slane %v262_v31, 4 }
  0x53   : > { %548 = vpow2.f32 %v286_v20  ;;  %v311_v41 = vrot.slane %v310_v35, 4 }
  0x54   : > { %v257_v43 = vadd.f32 %v256_v33, %v255_v26  ;;  %v305_v45 = vadd.f32 %v304_v37, %v303_v28  ;;  %v264_v47 = vadd.f32 %v263_v39, %v262_v31 }
  0x55   : > { %v312_v49 = vadd.f32 %v311_v41, %v310_v35 }
  0x56   : > { %v258_v51 = vrot.slane %v257_v43, 2  ;;  %v306_v53 = vrot.slane %v305_v45, 2  ;;  %v265_v55 = vrot.slane %v264_v47, 2 }
  0x57   : > { %v313_v57 = vrot.slane %v312_v49, 2 }
  0x58   : > { %v259_v58 = vadd.f32 %v258_v51, %v257_v43  ;;  %v307_v59 = vadd.f32 %v306_v53, %v305_v45  ;;  %v266_v60 = vadd.f32 %v265_v55, %v264_v47 }
  0x59   : > { %v314_v61 = vadd.f32 %v313_v57, %v312_v49 }
  0x5a   : > { %v260_v62 = vrot.slane %v259_v58, 1  ;;  %v308_v63 = vrot.slane %v307_v59, 1  ;;  %v267_v0 = vrot.slane %v266_v60, 1 }
  0x5b   : > { %v315_v1 = vrot.slane %v314_v61, 1 }
  0x5c   : > { %v261_v2 = vadd.f32 %v260_v62, %v259_v58  ;;  %v309_v3 = vadd.f32 %v308_v63, %v307_v59  ;;  %v268_v4 = vadd.f32 %v267_v0, %v266_v60 }
  0x5d   : > { %v316_v5 = vadd.f32 %v315_v1, %v314_v61 }
  0x5e   : > { %v269_v6 = vmul.f32 0.9, %v261_v2  ;;  %v317_v8 = vmul.f32 0.9, %v309_v3  ;;  %v271_v11 = vmul.f32 0.025, %v268_v4 }
  0x5f   : > { %v547_v27 = vpop.eup %546  ;;  %v319_v13 = vmul.f32 0.025, %v316_v5 }
  0x60   : > { %v549_v29 = vpop.eup %548  ;;  %v240_v30 = vsel %vm229_vm0, %v547_v27, 0.0 }
  0x61   : > { %v241_v32 = vrot.slane %v240_v30, 4  ;;  %v288_v34 = vsel %vm229_vm0, %v549_v29, 0.0 }
  0x62   : > { %v289_v36 = vrot.slane %v288_v34, 4 }
  0x63   : > { %v242_v38 = vadd.f32 %v241_v32, %v240_v30 }
  0x64   : > { %v290_v40 = vadd.f32 %v289_v36, %v288_v34 }
  0x65   : > { %v243_v42 = vrot.slane %v242_v38, 2 }
  0x66   : > { %v291_v44 = vrot.slane %v290_v40, 2 }
  0x67   : > { %v244_v46 = vadd.f32 %v243_v42, %v242_v38 }
  0x68   : > { %v292_v48 = vadd.f32 %v291_v44, %v290_v40 }
  0x69   : > { %v245_v50 = vrot.slane %v244_v46, 1 }
  0x6a   : > { %v293_v52 = vrot.slane %v292_v48, 1 }
  0x6b   : > { %v246_v54 = vadd.f32 %v245_v50, %v244_v46 }
  0x6c   : > { %v294_v56 = vadd.f32 %v293_v52, %v292_v48 }
  0x6d   : > { %550 = vlog2.f32 %v246_v54 }
  0x6e   : > { %552 = vlog2.f32 %v294_v56 }
  0x7a   : > { %v551_v7 = vpop.eup %550 }
  0x7b   : > { %v553_v9 = vpop.eup %552  ;;  %v248_v10 = vmul.f32 0.6931472, %v551_v7 }
  0x7c   : > { %v296_v12 = vmul.f32 0.6931472, %v553_v9 }
  0x7d   : > { %v270_v14 = vsub.f32 %v248_v10, %v269_v6 }
  0x7e   : > { %v318_v15 = vsub.f32 %v296_v12, %v317_v8 }
  0x7f   : > { %v272_v16 = vsub.f32 %v270_v14, %v271_v11 }
  0x80   : > { %v320_v17 = vsub.f32 %v318_v15, %v319_v13 }
  0x82   : > { %v321_v18 = vadd.f32 %v320_v17, %v272_v16 }
  0x84   : > { %v323_v19 = vsel %vm322_vm3, %v321_v18, 0.0 }
  0x85   : > { %324 = vadd.xlane.f32.xlu0 %v323_v19 }
 0x10e   : > { %v325_v20 = vpop.xlane.xlu0 %324 }
 0x10f   : > { %v326_v21 = vrot.slane %v325_v20, 4 }
 0x111   : > { %v327_v22 = vadd.f32 %v326_v21, %v325_v20 }
 0x113   : > { %v328_v23 = vrot.slane %v327_v22, 2 }
 0x115   : > { %v329_v24 = vadd.f32 %v328_v23, %v327_v22 }
 0x117   : > { %v330_v25 = vrot.slane %v329_v24, 1 }
 0x119   : > { %v331_v26 = vadd.f32 %v330_v25, %v329_v24 }
 0x11b   : > { %471 = vpush %v331_v26 }
 0x14c   : > { %s472_s8 = spop %471 }
 0x14d   : > { %v333_v27 = vstv %s472_s8 }
 0x14e   : > { %334 = vst [vmem:[%s222_s21] sm:$0x1] %v333_v27 }
 0x14f   : > { %623 = shalt.err (!%p620_p4)
}
 0x150   : > { %s624_s20 = scalar_lea.hbm %s348_s30, 16  ;;  %s628_s0 = scalar_lea.hbm %s897_s2, 32 }
 0x151   : > { %p625_p7 = scmp.ne.s32.totalorder %s348_s30, %s624_s20  ;;  %p629_p2 = scmp.lt.s32.totalorder %s348_s30, %s897_s2 }
 0x152   : > { %p630_p8 = scmp.lt.s32.totalorder %s628_s0, %s624_s20 }
 0x153   : > { %p626_p10 = pnand %p625_p7, %p771_p9 }
 0x154   : > { %p631_p0 = por %p630_p8, %p629_p2 }
 0x155   : > { %p627_p13 = pneg %p626_p10 }
 0x157   : > { %p632_p12 = pnand %p631_p0, %p627_p13 }
 0x159   : > { %635 = shalt.err (!%p632_p12)
}
 0x15a   : > { %477 = dma.vmem_to_hbm [thread:$0]  (%p771_p9), %s850_s3, 16, %s348_s30, %s336_s4  }
 0x15b PF: > { %s362_s27 = sand.u32 1, %s674_s9   ;;  %p906_p1 = scmp.ge.s32.totalorder %s694_s14, 2 }
 0x15c   : > { %s363_s29 = scalar_lea.sflag [#allocation4], %s362_s27 }
 0x15d   : > { %p487_p3 = pnand %p906_p1, %p778_p11 }
 0x15f   : > { %p488_p5 = pneg %p487_p3 }
 0x161   : > { %669 = dma.done.wait (%p488_p5), %s363_s29, 16  }
 0x162   : > { %671 = vsyncadd (%p488_p5), %s363_s29, 4294967280  ;;  %s21_s14 = sadd.s32 1, %s694_s14   ;;  %s907_s9 = smov %s678_s10 }
 0x163   : > { %p18_p6 = scmp.ge.s32.totalorder %s21_s14, 4   ;;  %s908_s10 = smov %s682_s11 }
 0x164   : > { %s909_s11 = smov %s776_s23  ;;  %s910_s12 = smov %s690_s13 }
 0x165   : > { %s911_s13 = smov %s913_s17  ;;  %20 = sbr.rel (!%p18_p6) target bundleno = 10 (0xa), region = 88 }
 0x16a   :  { %367 = vsyncpa [#allocation3], 1 }
 0x16b   :  { %369 = vsyncpa [#allocation3 + $0x1], 1 }
 0x16c   :  { %370 = vsyncpa [#allocation6], 1 }
 0x16d   :  { %372 = vsyncpa [#allocation6 + $0x1], 1 }
 0x16e   :  { %373 = vsyncpa [#allocation4], 1 }
 0x16f   :  { %375 = vsyncpa [#allocation4 + $0x1], 1 }

</bundles_post_ra>
